<compile_context>
chip_gen: v7x
topology: tpu7x:2x2x1
jax: 0.10.0
libtpu: 0.0.40
codegen_flags: <defaults>
</compile_context>

<pallas_src>
import functools
import math

import jax
import jax.numpy as jnp
from jax import lax
from jax.experimental import pallas as pl
from jax.experimental.pallas import tpu as pltpu


# ---------------------------------------------------------------------------
# Fused MHA kernel: one batch element per grid step.
# ---------------------------------------------------------------------------
def mha_kernel(q_ref, k_ref, v_ref,
               wq_ref, wk_ref, wv_ref, wo_ref,
               bq_ref, bk_ref, bv_ref, bo_ref,
               o_ref, w_ref, *, num_heads):
    q_in = q_ref[0]                          # (L, E)
    k_in = k_ref[0]                          # (S, E)
    v_in = v_ref[0]                          # (S, E)

    # Projections: weights are already (Ein, Eout); scale folded into wq/bq.
    q = jnp.dot(q_in, wq_ref[...], preferred_element_type=jnp.float32) + bq_ref[...]
    k = jnp.dot(k_in, wk_ref[...], preferred_element_type=jnp.float32) + bk_ref[...]
    v = jnp.dot(v_in, wv_ref[...], preferred_element_type=jnp.float32) + bv_ref[...]

    L, E = q.shape
    S = k.shape[0]
    head_dim = E // num_heads

    head_outs = []
    w_acc = jnp.zeros((L, S), jnp.float32)
    for h in range(num_heads):               # static unroll over heads
        lo = h * head_dim
        qh = q[:, lo:lo + head_dim]          # (L, Dh)
        kh = k[:, lo:lo + head_dim]          # (S, Dh)
        vh = v[:, lo:lo + head_dim]          # (S, Dh)
        # scores = qh @ kh.T expressed via dot_general (no in-kernel transpose)
        s = lax.dot_general(qh, kh, (((1,), (1,)), ((), ())),
                            preferred_element_type=jnp.float32)   # (L, S)
        m = jnp.max(s, axis=-1, keepdims=True)
        p = jnp.exp(s - m)
        denom = jnp.sum(p, axis=-1, keepdims=True)
        p = p * pl.reciprocal(denom, approx=True)    # EUP reciprocal (free slot)
        # TODO(synk): dropout on attention probs omitted (module default p=0.0).
        w_acc = w_acc + p
        head_outs.append(jnp.dot(p, vh, preferred_element_type=jnp.float32))

    attn = jnp.concatenate(head_outs, axis=-1)       # (L, E)
    out = jnp.dot(attn, wo_ref[...], preferred_element_type=jnp.float32) + bo_ref[...]

    o_ref[0] = out                                   # (L, E)
    w_ref[0] = w_acc * (1.0 / num_heads)             # head-averaged (L, S)


# ---------------------------------------------------------------------------
# Host wrapper
# ---------------------------------------------------------------------------
def prepare_params(params, num_heads):
    """One-time host-side prep: transpose weights to (Ein, Eout), fold scale."""
    E = params["wq"].shape[0]
    head_dim = E // num_heads
    scale = float(head_dim) ** (-0.5)
    f32 = jnp.float32
    return {
        "wq_t": (params["wq"].astype(f32) * scale).T,
        "bq":   (params["bq"].astype(f32) * scale).reshape(1, E),
        "wk_t": params["wk"].astype(f32).T,
        "bk":   params["bk"].astype(f32).reshape(1, E),
        "wv_t": params["wv"].astype(f32).T,
        "bv":   params["bv"].astype(f32).reshape(1, E),
        "wo_t": params["wo"].astype(f32).T,
        "bo":   params["bo"].astype(f32).reshape(1, E),
    }


def multihead_attention_forward(prep, query, key, value, num_heads):
    L, N, E = query.shape
    S = key.shape[0]
    head_dim = E // num_heads
    assert head_dim * num_heads == E

    # Batch-major layout so each grid step owns a contiguous (L, E)/(S, E) slab:
    # lane-dense last dim (= E), sublane-aligned second-to-last. These two tiny
    # transposes replace the 6+ reshape/transpose round trips of the unfused
    # version and are fused by XLA around the single pallas_call.
    q_bm = jnp.transpose(query, (1, 0, 2)).astype(jnp.float32)   # (N, L, E)
    k_bm = jnp.transpose(key,   (1, 0, 2)).astype(jnp.float32)   # (N, S, E)
    v_bm = jnp.transpose(value, (1, 0, 2)).astype(jnp.float32)   # (N, S, E)

    flops = (2 * E * E * N * (L + 2 * S)      # q/k/v projections
             + 4 * N * L * S * E              # scores + PV over all heads
             + 2 * E * E * N * L)             # out projection
    bytes_accessed = 4 * (2 * N * L * E + 2 * N * S * E
                          + 4 * E * E + 4 * E + N * L * S)

    kern = functools.partial(mha_kernel, num_heads=num_heads)
    weight_spec = pl.BlockSpec((E, E), lambda b: (0, 0))   # VMEM-resident
    bias_spec = pl.BlockSpec((1, E), lambda b: (0, 0))

    out_bm, avg_w = pl.pallas_call(
        kern,
        grid=(N,),
        in_specs=[
            pl.BlockSpec((1, L, E), lambda b: (b, 0, 0)),
            pl.BlockSpec((1, S, E), lambda b: (b, 0, 0)),
            pl.BlockSpec((1, S, E), lambda b: (b, 0, 0)),
            weight_spec, weight_spec, weight_spec, weight_spec,
            bias_spec, bias_spec, bias_spec, bias_spec,
        ],
        out_specs=(
            pl.BlockSpec((1, L, E), lambda b: (b, 0, 0)),
            pl.BlockSpec((1, L, S), lambda b: (b, 0, 0)),
        ),
        out_shape=(
            jax.ShapeDtypeStruct((N, L, E), jnp.float32),
            jax.ShapeDtypeStruct((N, L, S), jnp.float32),
        ),
        compiler_params=pltpu.CompilerParams(
            dimension_semantics=("parallel",)),
        cost_estimate=pl.CostEstimate(
            flops=flops,
            transcendentals=N * num_heads * L * S,
            bytes_accessed=bytes_accessed),
    )(q_bm, k_bm, v_bm,
      prep["wq_t"], prep["wk_t"], prep["wv_t"], prep["wo_t"],
      prep["bq"], prep["bk"], prep["bv"], prep["bo"])

    attn_output = jnp.transpose(out_bm, (1, 0, 2))   # back to (L, N, E)
    return attn_output, avg_w


# ---------------------------------------------------------------------------
# Deterministic parameter init (xavier_uniform weights, zero biases)
# ---------------------------------------------------------------------------
def xavier_uniform(rng, out_f, in_f):
    bound = math.sqrt(6.0 / (in_f + out_f))
    return jax.random.uniform(rng, (out_f, in_f), jnp.float32, -bound, bound)


def make_params(rng, embed_dim):
    k1, k2, k3, k4 = jax.random.split(rng, 4)
    zeros = jnp.zeros((embed_dim,), jnp.float32)
    return {
        "wq": xavier_uniform(k1, embed_dim, embed_dim), "bq": zeros,
        "wk": xavier_uniform(k2, embed_dim, embed_dim), "bk": zeros,
        "wv": xavier_uniform(k3, embed_dim, embed_dim), "bv": zeros,
        "wo": xavier_uniform(k4, embed_dim, embed_dim), "bo": zeros,
    }


# ---------------------------------------------------------------------------
# Pure-JAX reference for sanity check (uses the raw, untransformed params)
# ---------------------------------------------------------------------------
def reference_forward(params, query, key, value, num_heads):
    L, N, E = query.shape
    S = key.shape[0]
    head_dim = E // num_heads
    q = query @ params["wq"].T + params["bq"]
    k = key @ params["wk"].T + params["bk"]
    v = value @ params["wv"].T + params["bv"]
    q = q * head_dim ** (-0.5)

    def rs(x, T):
        x = jnp.transpose(x, (1, 0, 2)).reshape(N, T, num_heads, head_dim)
        return jnp.transpose(x, (0, 2, 1, 3)).reshape(N * num_heads, T, head_dim)

    qh, kh, vh = rs(q, L), rs(k, S), rs(v, S)
    s = jnp.einsum("bld,bsd->bls", qh, kh)
    p = jax.nn.softmax(s, axis=-1)
    o = jnp.einsum("bls,bsd->bld", p, vh)
    o = o.reshape(N, num_heads, L, head_dim).transpose(0, 2, 1, 3).reshape(N, L, E)
    o = jnp.transpose(o, (1, 0, 2))
    o = o @ params["wo"].T + params["bo"]
    return o, p.reshape(N, num_heads, L, S).sum(axis=1) / num_heads


if __name__ == "__main__":
    embed_dim = 32
    num_heads = 4
    L, S, N = 8, 8, 2

    root = jax.random.PRNGKey(0)
    kp, kq, kk, kv = jax.random.split(root, 4)
    params = make_params(kp, embed_dim)
    prep = prepare_params(params, num_heads)          # one-time host prep

    query = jax.random.normal(kq, (L, N, embed_dim), jnp.float32)
    key = jax.random.normal(kk, (S, N, embed_dim), jnp.float32)
    value = jax.random.normal(kv, (S, N, embed_dim), jnp.float32)

    fwd = jax.jit(functools.partial(multihead_attention_forward,
                                    num_heads=num_heads))
    out, avg_w = fwd(prep, query, key, value)
    out = jax.block_until_ready(out)
    avg_w = jax.block_until_ready(avg_w)

    ref_out, ref_w = reference_forward(params, query, key, value, num_heads)
    assert out.shape == (L, N, embed_dim)
    assert avg_w.shape == (N, L, S)
    assert jnp.allclose(out, ref_out, atol=2e-2, rtol=2e-2)
    assert jnp.allclose(avg_w, ref_w, atol=2e-2, rtol=2e-2)

    print("KERNEL_OK")
</pallas_src>

<mosaic_0001>
module attributes {stable_mosaic.version = 11 : i64} {
  func.func @mha_kernel(%arg0: i32, %arg1: memref<1x8x32xf32, #tpu.memory_space<vmem>>, %arg2: memref<1x8x32xf32, #tpu.memory_space<vmem>>, %arg3: memref<1x8x32xf32, #tpu.memory_space<vmem>>, %arg4: memref<32x32xf32, #tpu.memory_space<vmem>>, %arg5: memref<32x32xf32, #tpu.memory_space<vmem>>, %arg6: memref<32x32xf32, #tpu.memory_space<vmem>>, %arg7: memref<32x32xf32, #tpu.memory_space<vmem>>, %arg8: memref<1x32xf32, #tpu.memory_space<vmem>>, %arg9: memref<1x32xf32, #tpu.memory_space<vmem>>, %arg10: memref<1x32xf32, #tpu.memory_space<vmem>>, %arg11: memref<1x32xf32, #tpu.memory_space<vmem>>, %arg12: memref<1x8x32xf32, #tpu.memory_space<vmem>>, %arg13: memref<1x8x8xf32, #tpu.memory_space<vmem>>) attributes {dimension_semantics = [#tpu.dimension_semantics<parallel>], iteration_bounds = array<i64: 2>, scalar_prefetch = 0 : i64, scratch_operands = 0 : i64, tpu.core_type = #tpu.core_type<tc>, window_params = [{transform_indices = @transform_0, window_bounds = array<i64: 1, 8, 32>}, {transform_indices = @transform_1, window_bounds = array<i64: 1, 8, 32>}, {transform_indices = @transform_2, window_bounds = array<i64: 1, 8, 32>}, {pipeline_mode = #tpu.pipeline_mode<synchronous>, transform_indices = @transform_3, window_bounds = array<i64: 32, 32>}, {pipeline_mode = #tpu.pipeline_mode<synchronous>, transform_indices = @transform_4, window_bounds = array<i64: 32, 32>}, {pipeline_mode = #tpu.pipeline_mode<synchronous>, transform_indices = @transform_5, window_bounds = array<i64: 32, 32>}, {pipeline_mode = #tpu.pipeline_mode<synchronous>, transform_indices = @transform_6, window_bounds = array<i64: 32, 32>}, {pipeline_mode = #tpu.pipeline_mode<synchronous>, transform_indices = @transform_7, window_bounds = array<i64: 1, 32>}, {pipeline_mode = #tpu.pipeline_mode<synchronous>, transform_indices = @transform_8, window_bounds = array<i64: 1, 32>}, {pipeline_mode = #tpu.pipeline_mode<synchronous>, transform_indices = @transform_9, window_bounds = array<i64: 1, 32>}, {pipeline_mode = #tpu.pipeline_mode<synchronous>, transform_indices = @transform_10, window_bounds = array<i64: 1, 32>}, {transform_indices = @transform_11, window_bounds = array<i64: 1, 8, 32>}, {transform_indices = @transform_12, window_bounds = array<i64: 1, 8, 8>}]} {
    %c0 = arith.constant 0 : index
    %c0_0 = arith.constant 0 : index
    %c0_1 = arith.constant 0 : index
    %0 = vector.load %arg1[%c0, %c0_0, %c0_1] : memref<1x8x32xf32, #tpu.memory_space<vmem>>, vector<1x8x32xf32>
    %1 = vector.shape_cast %0 : vector<1x8x32xf32> to vector<8x32xf32>
    %c0_2 = arith.constant 0 : index
    %c0_3 = arith.constant 0 : index
    %c0_4 = arith.constant 0 : index
    %2 = vector.load %arg2[%c0_2, %c0_3, %c0_4] : memref<1x8x32xf32, #tpu.memory_space<vmem>>, vector<1x8x32xf32>
    %3 = vector.shape_cast %2 : vector<1x8x32xf32> to vector<8x32xf32>
    %c0_5 = arith.constant 0 : index
    %c0_6 = arith.constant 0 : index
    %c0_7 = arith.constant 0 : index
    %4 = vector.load %arg3[%c0_5, %c0_6, %c0_7] : memref<1x8x32xf32, #tpu.memory_space<vmem>>, vector<1x8x32xf32>
    %5 = vector.shape_cast %4 : vector<1x8x32xf32> to vector<8x32xf32>
    %c0_8 = arith.constant 0 : index
    %c0_9 = arith.constant 0 : index
    %6 = vector.load %arg4[%c0_8, %c0_9] : memref<32x32xf32, #tpu.memory_space<vmem>>, vector<32x32xf32>
    %cst = arith.constant dense<0.000000e+00> : vector<8x32xf32>
    %7 = tpu.matmul %1, %6, %cst {dimension_numbers = #tpu.dot_dimension_numbers<[1], [0], [0], [1], [0, 0, 1, 1], [], []>} : vector<8x32xf32>, vector<32x32xf32>, vector<8x32xf32> -> vector<8x32xf32>
    %c0_10 = arith.constant 0 : index
    %c0_11 = arith.constant 0 : index
    %8 = vector.load %arg8[%c0_10, %c0_11] : memref<1x32xf32, #tpu.memory_space<vmem>>, vector<1x32xf32>
    %9 = vector.broadcast %8 : vector<1x32xf32> to vector<8x32xf32>
    %10 = arith.addf %7, %9 : vector<8x32xf32>
    %c0_12 = arith.constant 0 : index
    %c0_13 = arith.constant 0 : index
    %11 = vector.load %arg5[%c0_12, %c0_13] : memref<32x32xf32, #tpu.memory_space<vmem>>, vector<32x32xf32>
    %cst_14 = arith.constant dense<0.000000e+00> : vector<8x32xf32>
    %12 = tpu.matmul %3, %11, %cst_14 {dimension_numbers = #tpu.dot_dimension_numbers<[1], [0], [0], [1], [0, 0, 1, 1], [], []>} : vector<8x32xf32>, vector<32x32xf32>, vector<8x32xf32> -> vector<8x32xf32>
    %c0_15 = arith.constant 0 : index
    %c0_16 = arith.constant 0 : index
    %13 = vector.load %arg9[%c0_15, %c0_16] : memref<1x32xf32, #tpu.memory_space<vmem>>, vector<1x32xf32>
    %14 = vector.broadcast %13 : vector<1x32xf32> to vector<8x32xf32>
    %15 = arith.addf %12, %14 : vector<8x32xf32>
    %c0_17 = arith.constant 0 : index
    %c0_18 = arith.constant 0 : index
    %16 = vector.load %arg6[%c0_17, %c0_18] : memref<32x32xf32, #tpu.memory_space<vmem>>, vector<32x32xf32>
    %cst_19 = arith.constant dense<0.000000e+00> : vector<8x32xf32>
    %17 = tpu.matmul %5, %16, %cst_19 {dimension_numbers = #tpu.dot_dimension_numbers<[1], [0], [0], [1], [0, 0, 1, 1], [], []>} : vector<8x32xf32>, vector<32x32xf32>, vector<8x32xf32> -> vector<8x32xf32>
    %c0_20 = arith.constant 0 : index
    %c0_21 = arith.constant 0 : index
    %18 = vector.load %arg10[%c0_20, %c0_21] : memref<1x32xf32, #tpu.memory_space<vmem>>, vector<1x32xf32>
    %19 = vector.broadcast %18 : vector<1x32xf32> to vector<8x32xf32>
    %20 = arith.addf %17, %19 : vector<8x32xf32>
    %cst_22 = arith.constant 0.000000e+00 : f32
    %21 = vector.broadcast %cst_22 : f32 to vector<8x8xf32>
    %22 = vector.extract_strided_slice %10 {offsets = [0, 0], sizes = [8, 8], strides = [1, 1]} : vector<8x32xf32> to vector<8x8xf32>
    %23 = vector.extract_strided_slice %15 {offsets = [0, 0], sizes = [8, 8], strides = [1, 1]} : vector<8x32xf32> to vector<8x8xf32>
    %24 = vector.extract_strided_slice %20 {offsets = [0, 0], sizes = [8, 8], strides = [1, 1]} : vector<8x32xf32> to vector<8x8xf32>
    %cst_23 = arith.constant dense<0.000000e+00> : vector<8x8xf32>
    %25 = tpu.matmul %22, %23, %cst_23 {dimension_numbers = #tpu.dot_dimension_numbers<[1], [1], [0], [0], [0, 0, 1, 0], [], []>} : vector<8x8xf32>, vector<8x8xf32>, vector<8x8xf32> -> vector<8x8xf32>
    %cst_24 = arith.constant dense<0xFF800000> : vector<8xf32>
    %26 = vector.multi_reduction <maximumf>, %25, %cst_24 [1] : vector<8x8xf32> to vector<8xf32>
    %27 = vector.shape_cast %26 : vector<8xf32> to vector<8x1xf32>
    %28 = vector.broadcast %27 : vector<8x1xf32> to vector<8x8xf32>
    %29 = arith.subf %25, %28 : vector<8x8xf32>
    %30 = math.exp %29 : vector<8x8xf32>
    %cst_25 = arith.constant dense<0.000000e+00> : vector<8xf32>
    %31 = vector.multi_reduction <add>, %30, %cst_25 [1] : vector<8x8xf32> to vector<8xf32>
    %32 = vector.shape_cast %31 : vector<8xf32> to vector<8x1xf32>
    %33 = tpu.reciprocal %32 {approx = true} : vector<8x1xf32> -> vector<8x1xf32>
    %34 = vector.broadcast %33 : vector<8x1xf32> to vector<8x8xf32>
    %35 = arith.mulf %30, %34 : vector<8x8xf32>
    %36 = arith.addf %21, %35 : vector<8x8xf32>
    %cst_26 = arith.constant dense<0.000000e+00> : vector<8x8xf32>
    %37 = tpu.matmul %35, %24, %cst_26 {dimension_numbers = #tpu.dot_dimension_numbers<[1], [0], [0], [1], [0, 0, 1, 1], [], []>} : vector<8x8xf32>, vector<8x8xf32>, vector<8x8xf32> -> vector<8x8xf32>
    %38 = vector.extract_strided_slice %10 {offsets = [0, 8], sizes = [8, 8], strides = [1, 1]} : vector<8x32xf32> to vector<8x8xf32>
    %39 = vector.extract_strided_slice %15 {offsets = [0, 8], sizes = [8, 8], strides = [1, 1]} : vector<8x32xf32> to vector<8x8xf32>
    %40 = vector.extract_strided_slice %20 {offsets = [0, 8], sizes = [8, 8], strides = [1, 1]} : vector<8x32xf32> to vector<8x8xf32>
    %cst_27 = arith.constant dense<0.000000e+00> : vector<8x8xf32>
    %41 = tpu.matmul %38, %39, %cst_27 {dimension_numbers = #tpu.dot_dimension_numbers<[1], [1], [0], [0], [0, 0, 1, 0], [], []>} : vector<8x8xf32>, vector<8x8xf32>, vector<8x8xf32> -> vector<8x8xf32>
    %cst_28 = arith.constant dense<0xFF800000> : vector<8xf32>
    %42 = vector.multi_reduction <maximumf>, %41, %cst_28 [1] : vector<8x8xf32> to vector<8xf32>
    %43 = vector.shape_cast %42 : vector<8xf32> to vector<8x1xf32>
    %44 = vector.broadcast %43 : vector<8x1xf32> to vector<8x8xf32>
    %45 = arith.subf %41, %44 : vector<8x8xf32>
    %46 = math.exp %45 : vector<8x8xf32>
    %cst_29 = arith.constant dense<0.000000e+00> : vector<8xf32>
    %47 = vector.multi_reduction <add>, %46, %cst_29 [1] : vector<8x8xf32> to vector<8xf32>
    %48 = vector.shape_cast %47 : vector<8xf32> to vector<8x1xf32>
    %49 = tpu.reciprocal %48 {approx = true} : vector<8x1xf32> -> vector<8x1xf32>
    %50 = vector.broadcast %49 : vector<8x1xf32> to vector<8x8xf32>
    %51 = arith.mulf %46, %50 : vector<8x8xf32>
    %52 = arith.addf %36, %51 : vector<8x8xf32>
    %cst_30 = arith.constant dense<0.000000e+00> : vector<8x8xf32>
    %53 = tpu.matmul %51, %40, %cst_30 {dimension_numbers = #tpu.dot_dimension_numbers<[1], [0], [0], [1], [0, 0, 1, 1], [], []>} : vector<8x8xf32>, vector<8x8xf32>, vector<8x8xf32> -> vector<8x8xf32>
    %54 = vector.extract_strided_slice %10 {offsets = [0, 16], sizes = [8, 8], strides = [1, 1]} : vector<8x32xf32> to vector<8x8xf32>
    %55 = vector.extract_strided_slice %15 {offsets = [0, 16], sizes = [8, 8], strides = [1, 1]} : vector<8x32xf32> to vector<8x8xf32>
    %56 = vector.extract_strided_slice %20 {offsets = [0, 16], sizes = [8, 8], strides = [1, 1]} : vector<8x32xf32> to vector<8x8xf32>
    %cst_31 = arith.constant dense<0.000000e+00> : vector<8x8xf32>
    %57 = tpu.matmul %54, %55, %cst_31 {dimension_numbers = #tpu.dot_dimension_numbers<[1], [1], [0], [0], [0, 0, 1, 0], [], []>} : vector<8x8xf32>, vector<8x8xf32>, vector<8x8xf32> -> vector<8x8xf32>
    %cst_32 = arith.constant dense<0xFF800000> : vector<8xf32>
    %58 = vector.multi_reduction <maximumf>, %57, %cst_32 [1] : vector<8x8xf32> to vector<8xf32>
    %59 = vector.shape_cast %58 : vector<8xf32> to vector<8x1xf32>
    %60 = vector.broadcast %59 : vector<8x1xf32> to vector<8x8xf32>
    %61 = arith.subf %57, %60 : vector<8x8xf32>
    %62 = math.exp %61 : vector<8x8xf32>
    %cst_33 = arith.constant dense<0.000000e+00> : vector<8xf32>
    %63 = vector.multi_reduction <add>, %62, %cst_33 [1] : vector<8x8xf32> to vector<8xf32>
    %64 = vector.shape_cast %63 : vector<8xf32> to vector<8x1xf32>
    %65 = tpu.reciprocal %64 {approx = true} : vector<8x1xf32> -> vector<8x1xf32>
    %66 = vector.broadcast %65 : vector<8x1xf32> to vector<8x8xf32>
    %67 = arith.mulf %62, %66 : vector<8x8xf32>
    %68 = arith.addf %52, %67 : vector<8x8xf32>
    %cst_34 = arith.constant dense<0.000000e+00> : vector<8x8xf32>
    %69 = tpu.matmul %67, %56, %cst_34 {dimension_numbers = #tpu.dot_dimension_numbers<[1], [0], [0], [1], [0, 0, 1, 1], [], []>} : vector<8x8xf32>, vector<8x8xf32>, vector<8x8xf32> -> vector<8x8xf32>
    %70 = vector.extract_strided_slice %10 {offsets = [0, 24], sizes = [8, 8], strides = [1, 1]} : vector<8x32xf32> to vector<8x8xf32>
    %71 = vector.extract_strided_slice %15 {offsets = [0, 24], sizes = [8, 8], strides = [1, 1]} : vector<8x32xf32> to vector<8x8xf32>
    %72 = vector.extract_strided_slice %20 {offsets = [0, 24], sizes = [8, 8], strides = [1, 1]} : vector<8x32xf32> to vector<8x8xf32>
    %cst_35 = arith.constant dense<0.000000e+00> : vector<8x8xf32>
    %73 = tpu.matmul %70, %71, %cst_35 {dimension_numbers = #tpu.dot_dimension_numbers<[1], [1], [0], [0], [0, 0, 1, 0], [], []>} : vector<8x8xf32>, vector<8x8xf32>, vector<8x8xf32> -> vector<8x8xf32>
    %cst_36 = arith.constant dense<0xFF800000> : vector<8xf32>
    %74 = vector.multi_reduction <maximumf>, %73, %cst_36 [1] : vector<8x8xf32> to vector<8xf32>
    %75 = vector.shape_cast %74 : vector<8xf32> to vector<8x1xf32>
    %76 = vector.broadcast %75 : vector<8x1xf32> to vector<8x8xf32>
    %77 = arith.subf %73, %76 : vector<8x8xf32>
    %78 = math.exp %77 : vector<8x8xf32>
    %cst_37 = arith.constant dense<0.000000e+00> : vector<8xf32>
    %79 = vector.multi_reduction <add>, %78, %cst_37 [1] : vector<8x8xf32> to vector<8xf32>
    %80 = vector.shape_cast %79 : vector<8xf32> to vector<8x1xf32>
    %81 = tpu.reciprocal %80 {approx = true} : vector<8x1xf32> -> vector<8x1xf32>
    %82 = vector.broadcast %81 : vector<8x1xf32> to vector<8x8xf32>
    %83 = arith.mulf %78, %82 : vector<8x8xf32>
    %84 = arith.addf %68, %83 : vector<8x8xf32>
    %cst_38 = arith.constant dense<0.000000e+00> : vector<8x8xf32>
    %85 = tpu.matmul %83, %72, %cst_38 {dimension_numbers = #tpu.dot_dimension_numbers<[1], [0], [0], [1], [0, 0, 1, 1], [], []>} : vector<8x8xf32>, vector<8x8xf32>, vector<8x8xf32> -> vector<8x8xf32>
    %86 = tpu.concatenate %37, %53, %69, %85 in 1 : vector<8x8xf32>, vector<8x8xf32>, vector<8x8xf32>, vector<8x8xf32> -> vector<8x32xf32>
    %c0_39 = arith.constant 0 : index
    %c0_40 = arith.constant 0 : index
    %87 = vector.load %arg7[%c0_39, %c0_40] : memref<32x32xf32, #tpu.memory_space<vmem>>, vector<32x32xf32>
    %cst_41 = arith.constant dense<0.000000e+00> : vector<8x32xf32>
    %88 = tpu.matmul %86, %87, %cst_41 {dimension_numbers = #tpu.dot_dimension_numbers<[1], [0], [0], [1], [0, 0, 1, 1], [], []>} : vector<8x32xf32>, vector<32x32xf32>, vector<8x32xf32> -> vector<8x32xf32>
    %c0_42 = arith.constant 0 : index
    %c0_43 = arith.constant 0 : index
    %89 = vector.load %arg11[%c0_42, %c0_43] : memref<1x32xf32, #tpu.memory_space<vmem>>, vector<1x32xf32>
    %90 = vector.broadcast %89 : vector<1x32xf32> to vector<8x32xf32>
    %91 = arith.addf %88, %90 : vector<8x32xf32>
    %c0_44 = arith.constant 0 : index
    %c0_45 = arith.constant 0 : index
    %c0_46 = arith.constant 0 : index
    %92 = vector.load %arg12[%c0_44, %c0_45, %c0_46] : memref<1x8x32xf32, #tpu.memory_space<vmem>>, vector<1x8x32xf32>
    %93 = vector.shape_cast %92 : vector<1x8x32xf32> to vector<8x32xf32>
    %94 = vector.shape_cast %91 : vector<8x32xf32> to vector<1x8x32xf32>
    tpu.vector_store %arg12[%c0_44, %c0_45, %c0_46], %94 {strides = array<i32>} : memref<1x8x32xf32, #tpu.memory_space<vmem>>, vector<1x8x32xf32>,
    %cst_47 = arith.constant 2.500000e-01 : f32
    %95 = vector.broadcast %cst_47 : f32 to vector<8x8xf32>
    %96 = arith.mulf %84, %95 : vector<8x8xf32>
    %c0_48 = arith.constant 0 : index
    %c0_49 = arith.constant 0 : index
    %c0_50 = arith.constant 0 : index
    %97 = vector.load %arg13[%c0_48, %c0_49, %c0_50] : memref<1x8x8xf32, #tpu.memory_space<vmem>>, vector<1x8x8xf32>
    %98 = vector.shape_cast %97 : vector<1x8x8xf32> to vector<8x8xf32>
    %99 = vector.shape_cast %96 : vector<8x8xf32> to vector<1x8x8xf32>
    tpu.vector_store %arg13[%c0_48, %c0_49, %c0_50], %99 {strides = array<i32>} : memref<1x8x8xf32, #tpu.memory_space<vmem>>, vector<1x8x8xf32>,
    return
  }
  func.func @transform_0(%arg0: i32) -> (i32, i32, i32) {
    %c0_i32 = arith.constant 0 : i32
    %c0_i32_0 = arith.constant 0 : i32
    %c0_i32_1 = arith.constant 0 : i32
    return %arg0, %c0_i32, %c0_i32_0 : i32, i32, i32
  }
  func.func @transform_1(%arg0: i32) -> (i32, i32, i32) {
    %c0_i32 = arith.constant 0 : i32
    %c0_i32_0 = arith.constant 0 : i32
    %c0_i32_1 = arith.constant 0 : i32
    return %arg0, %c0_i32, %c0_i32_0 : i32, i32, i32
  }
  func.func @transform_2(%arg0: i32) -> (i32, i32, i32) {
    %c0_i32 = arith.constant 0 : i32
    %c0_i32_0 = arith.constant 0 : i32
    %c0_i32_1 = arith.constant 0 : i32
    return %arg0, %c0_i32, %c0_i32_0 : i32, i32, i32
  }
  func.func @transform_3(%arg0: i32) -> (i32, i32) {
    %c0_i32 = arith.constant 0 : i32
    %c0_i32_0 = arith.constant 0 : i32
    %c0_i32_1 = arith.constant 0 : i32
    return %c0_i32, %c0_i32_0 : i32, i32
  }
  func.func @transform_4(%arg0: i32) -> (i32, i32) {
    %c0_i32 = arith.constant 0 : i32
    %c0_i32_0 = arith.constant 0 : i32
    %c0_i32_1 = arith.constant 0 : i32
    return %c0_i32, %c0_i32_0 : i32, i32
  }
  func.func @transform_5(%arg0: i32) -> (i32, i32) {
    %c0_i32 = arith.constant 0 : i32
    %c0_i32_0 = arith.constant 0 : i32
    %c0_i32_1 = arith.constant 0 : i32
    return %c0_i32, %c0_i32_0 : i32, i32
  }
  func.func @transform_6(%arg0: i32) -> (i32, i32) {
    %c0_i32 = arith.constant 0 : i32
    %c0_i32_0 = arith.constant 0 : i32
    %c0_i32_1 = arith.constant 0 : i32
    return %c0_i32, %c0_i32_0 : i32, i32
  }
  func.func @transform_7(%arg0: i32) -> (i32, i32) {
    %c0_i32 = arith.constant 0 : i32
    %c0_i32_0 = arith.constant 0 : i32
    %c0_i32_1 = arith.constant 0 : i32
    return %c0_i32, %c0_i32_0 : i32, i32
  }
  func.func @transform_8(%arg0: i32) -> (i32, i32) {
    %c0_i32 = arith.constant 0 : i32
    %c0_i32_0 = arith.constant 0 : i32
    %c0_i32_1 = arith.constant 0 : i32
    return %c0_i32, %c0_i32_0 : i32, i32
  }
  func.func @transform_9(%arg0: i32) -> (i32, i32) {
    %c0_i32 = arith.constant 0 : i32
    %c0_i32_0 = arith.constant 0 : i32
    %c0_i32_1 = arith.constant 0 : i32
    return %c0_i32, %c0_i32_0 : i32, i32
  }
  func.func @transform_10(%arg0: i32) -> (i32, i32) {
    %c0_i32 = arith.constant 0 : i32
    %c0_i32_0 = arith.constant 0 : i32
    %c0_i32_1 = arith.constant 0 : i32
    return %c0_i32, %c0_i32_0 : i32, i32
  }
  func.func @transform_11(%arg0: i32) -> (i32, i32, i32) {
    %c0_i32 = arith.constant 0 : i32
    %c0_i32_0 = arith.constant 0 : i32
    %c0_i32_1 = arith.constant 0 : i32
    return %arg0, %c0_i32, %c0_i32_0 : i32, i32, i32
  }
  func.func @transform_12(%arg0: i32) -> (i32, i32, i32) {
    %c0_i32 = arith.constant 0 : i32
    %c0_i32_0 = arith.constant 0 : i32
    %c0_i32_1 = arith.constant 0 : i32
    return %arg0, %c0_i32, %c0_i32_0 : i32, i32, i32
  }
}

</mosaic_0001>

<bundles_post_ra>
// kernel: multihead_attention_forward.1
= control target key start
LH: loop header
LB: loop body
LE: loop exit
PB: predicated region body
PF: predicated region fallthrough
CT: control target
= control target key end

     0   :  { %s2534_s0 = inlined_call_operand.vmem [shape: f32[2,8,32], index: 0, kind: input, shape index: {}]   ;;  %s2535_s1 = inlined_call_operand.vmem [shape: f32[2,8,32], index: 1, kind: input, shape index: {}]   ;;  %s2536_s2 = inlined_call_operand.vmem [shape: f32[2,8,32], index: 2, kind: input, shape index: {}]   ;;  %s2537_s3 = inlined_call_operand.vmem [shape: f32[32,32], index: 3, kind: input, shape index: {}]   ;;  %s2538_s4 = inlined_call_operand.vmem [shape: f32[32,32], index: 4, kind: input, shape index: {}]   ;;  %s2539_s5 = inlined_call_operand.vmem [shape: f32[32,32], index: 5, kind: input, shape index: {}]   ;;  %s2540_s6 = inlined_call_operand.hbm [shape: f32[32,32], index: 6, kind: input, shape index: {}]   ;;  %s2541_s7 = inlined_call_operand.vmem [shape: f32[1,32], index: 7, kind: input, shape index: {}]   ;;  %s2542_s8 = inlined_call_operand.vmem [shape: f32[1,32], index: 8, kind: input, shape index: {}]   ;;  %s2543_s9 = inlined_call_operand.hbm [shape: f32[1,32], index: 9, kind: input, shape index: {}]   ;;  %s2544_s10 = inlined_call_operand.hbm [shape: f32[1,32], index: 10, kind: input, shape index: {}]   ;;  %s2545_s11 = inlined_call_operand.vmem [shape: f32[2,8,32], index: 11, kind: output, shape index: {0}]   ;;  %s2546_s12 = inlined_call_operand.hbm [shape: f32[2,8,8], index: 12, kind: output, shape index: {1}]  }
   0x1   :  { %2556 = sst [smem:[#allocation18_spill]] %s2543_s9 }
   0x2   :  { %18 = vsyncpa [#allocation3], 0 }
   0x3   :  { %19 = vsyncpa [#allocation6], 0 }
   0x4   :  { %20 = vsyncpa [#allocation4], 0 }
   0x5   :  { %22 = vsyncpa [#allocation4 + $0x1], 0  ;;  %s2190_s21 = smov 0   ;;  %s2192_s22 = smov 0  }
   0x6   :  { %s2194_s23 = smov 0   ;;  %s2196_s24 = smov 0  }
   0x7 LB: > { %2557 = sst [smem:[#allocation12_spill]] %s2096_s21  ;;  %s2211_s25 = sadd.s32 4294967295, %s2108_s24   ;;  %s2108_s24 = sphi %s2196_s24, %s2579_s24   ;;  %s2104_s23 = sphi %s2194_s23, %s2581_s23   ;;  %s2100_s22 = sphi %s2192_s22, %s2583_s22   ;;  %s2096_s21 = sphi %s2190_s21, %s2582_s21  }
   0x8   : > { %2558 = sst [smem:[#allocation13_spill]] %s2104_s23  ;;  %s1674_s26 = sadd.s32 4294967294, %s2108_s24  }
   0x9   : > { %2559 = sst [smem:[#allocation14_spill]] %s2108_s24  ;;  %s2215_s27 = sadd.s32 1, %s2108_s24  }
   0xa   : > { %2560 = sst [smem:[#allocation15_spill]] %s2215_s27  ;;  %s307_s28 = sadd.s32 1, %s2104_s23 }
   0xb   : > { %s304_s29 = ssub.s32 %s2108_s24, %s2215_s27  ;;  %p317_p0 = scmp.ne.s32.totalorder %s2104_s23, %s2100_s22 }
   0xc   : > { %p305_p1 = scmp.eq.s32.totalorder %s304_s29, 0  ;;  %p318_p2 = scmp.eq.s32.totalorder %s2211_s25, 1 }
   0xd   : > { %p323_p3 = scmp.ne.s32.totalorder %s2100_s22, %s2096_s21  ;;  %p324_p4 = scmp.eq.s32.totalorder %s1674_s26, 1 }
   0xe   : > { %s2226_s30 = scalar_select %p305_p1, %s2104_s23, %s307_s28  }
   0xf   : > { %p2228_p5 = por %p318_p2, %p317_p0  ;;  %p2232_p6 = por %p324_p4, %p323_p3 }
  0x10   : > { %2561 = sst [smem:[#allocation16_spill]] %s2226_s30  ;;  %p1675_p7 = scmp.ge.s32.totalorder %s2108_s24, 1 }
  0x11   : > { %s2562_s13 = scalar_select %p2228_p5, 1, 0 }
  0x12   : > { %s2563_s14 = scalar_select %p2232_p6, 1, 0 }
  0x13   : > { %p331_p8 = scmp.lt.s32.totalorder %s2108_s24, 3  ;;  %p2551_p9 = scmp.eq.s32.totalorder %s2211_s25, 0 }
  0x14   : > { %2564 = sst [smem:[#allocation17_spill]] %s2563_s14  ;;  %s2110_s16 = smov [#allocation5]  }
  0x15   : > { %p2239_p10 = pnand %p1675_p7, %p331_p8  ;;  %s372_s17 = sshll.u32 %s2110_s16, 4  ;;  %s373_s17 = int_to_ptr.vmem [resolvable:$true] %s372_s17 }
  0x16   : > { %s2111_s18 = smov [#allocation2]   ;;  %s2112_s26 = smov [#allocation7]  }
  0x17   : > { %s2565_s15 = scalar_select %p2239_p10, 1, 0 }
  0x18   : > { %p1871_p11 = pneg %p2239_p10  ;;  %s352_s19 = sshll.u32 %s2111_s18, 4  ;;  %s2251_s19 = int_to_ptr.vmem [resolvable:$true] %s352_s19 }
  0x19   : > { %s2253_s28 = sshll.u32 %s2112_s26, 4  ;;  %s2567_s9 = sld [smem:[#allocation18_spill]]  ;;  %s384_s28 = int_to_ptr.vmem [resolvable:$true] %s2253_s28 }
  0x1a   : > { %p2247_p12 = pnand %p2551_p9, %p1871_p11 }
  0x1c   : > { %p2263_p0 = pneg %p2247_p12 }
  0x1f   : > { %s1954_s16 = scalar_lea.hbm %s2567_s9, 16 }
  0x20   : > { %p1955_p13 = scmp.ne.s32.totalorder %s2567_s9, %s1954_s16  ;;  %p1961_p3 = scmp.lt.u32.totalorder %s1954_s16, %s2567_s9 }
  0x22   : > { %p1957_p1 = pnand %p2263_p0, %p1955_p13 }
  0x24   : > { %p1958_p2 = pneg %p1957_p1 }
  0x26   : > { %p1963_p4 = pnand %p1961_p3, %p1958_p2 }
  0x28   : > { %1966 = shalt.err (!%p1963_p4)
}
  0x29   : > { %s1967_s30 = scalar_lea.vmem %s373_s17, 16  ;;  %s1974_s23 = scalar_lea.vmem %s373_s17, 32 }
  0x2a   : > { %p1968_p7 = scmp.ne.s32.totalorder %s373_s17, %s1967_s30  ;;  %p1975_p9 = scmp.lt.s32.totalorder %s373_s17, %s373_s17 }
  0x2b   : > { %p1976_p6 = scmp.lt.s32.totalorder %s1974_s23, %s1967_s30 }
  0x2c   : > { %p1970_p8 = pnand %p1968_p7, %p2263_p0 }
  0x2d   : > { %p1977_p5 = por %p1976_p6, %p1975_p9 }
  0x2e   : > { %p1971_p11 = pneg %p1970_p8 }
  0x30   : > { %p1978_p10 = pnand %p1977_p5, %p1971_p11 }
  0x32   : > { %1981 = shalt.err (!%p1978_p10)
}
  0x33   : > { %1877 = dma.hbm_to_vmem [thread:$0]  (!%p2247_p12), %s2567_s9, 16, %s373_s17, [#allocation6]  }
  0x34   : > { %s1982_s26 = scalar_lea.hbm %s2540_s6, 512 }
  0x35   : > { %p1983_p13 = scmp.ne.s32.totalorder %s2540_s6, %s1982_s26  ;;  %p1989_p5 = scmp.lt.u32.totalorder %s1982_s26, %s2540_s6 }
  0x37   : > { %p1985_p1 = pnand %p1983_p13, %p2263_p0 }
  0x39   : > { %p1986_p6 = pneg %p1985_p1 }
  0x3b   : > { %p1991_p9 = pnand %p1989_p5, %p1986_p6 }
  0x3d   : > { %1994 = shalt.err (!%p1991_p9)
}
  0x3e   : > { %s1995_s17 = scalar_lea.vmem %s2251_s19, 512  ;;  %p2003_p4 = scmp.lt.s32.totalorder %s2251_s19, %s2251_s19 }
  0x3f   : > { %p1996_p10 = scmp.ne.s32.totalorder %s2251_s19, %s1995_s17  ;;  %p2004_p7 = scmp.lt.s32.totalorder %s1995_s17, %s1995_s17 }
  0x41   : > { %p1998_p2 = pnand %p1996_p10, %p2263_p0  ;;  %p2005_p8 = por %p2004_p7, %p2003_p4 }
  0x43   : > { %p1999_p3 = pneg %p1998_p2 }
  0x45   : > { %p2006_p11 = pnand %p2005_p8, %p1999_p3 }
  0x47   : > { %2009 = shalt.err (!%p2006_p11)
}
  0x48   : > { %s2113_s21 = smov 128   ;;  %s2114_s24 = smov 8  }
  0x49   : > { %1874 = dma.hbm_to_vmem [thread:$0]  (!%p2247_p12), %s2540_s6, 512, %s2251_s19, [#allocation3], %s2113_s21, %s2113_s21, %s2114_s24  }
  0x4a   : > { %s2010_s26 = scalar_lea.hbm %s2544_s10, 16 }
  0x4b   : > { %p2011_p13 = scmp.ne.s32.totalorder %s2544_s10, %s2010_s26  ;;  %p2017_p5 = scmp.lt.u32.totalorder %s2010_s26, %s2544_s10 }
  0x4d   : > { %p2013_p1 = pnand %p2011_p13, %p2263_p0 }
  0x4f   : > { %p2014_p6 = pneg %p2013_p1 }
  0x51   : > { %p2019_p9 = pnand %p2017_p5, %p2014_p6 }
  0x53   : > { %2022 = shalt.err (!%p2019_p9)
}
  0x54   : > { %s2023_s27 = scalar_lea.vmem %s384_s28, 16  ;;  %s2030_s19 = scalar_lea.vmem %s384_s28, 32 }
  0x55   : > { %p2024_p10 = scmp.ne.s32.totalorder %s384_s28, %s2023_s27  ;;  %p2031_p4 = scmp.lt.s32.totalorder %s384_s28, %s384_s28 }
  0x56   : > { %p2032_p7 = scmp.lt.s32.totalorder %s2030_s19, %s2023_s27 }
  0x57   : > { %p2026_p2 = pnand %p2024_p10, %p2263_p0 }
  0x58   : > { %p2033_p8 = por %p2032_p7, %p2031_p4 }
  0x59   : > { %p2027_p3 = pneg %p2026_p2 }
  0x5b   : > { %p2034_p11 = pnand %p2033_p8, %p2027_p3 }
  0x5d   : > { %2037 = shalt.err (!%p2034_p11)
}
  0x5e   : > { %1880 = dma.hbm_to_vmem [thread:$0]  (!%p2247_p12), %s2544_s10, 16, %s384_s28, [#allocation6]  }
  0x5f   : > { %p2569_p13 = scmp.ne.s32.totalorder %s2565_s15, 0 }
  0x60   : > { %p2570_p1 = scmp.eq.s32.totalorder (!%p2569_p13), %s2211_s25, 0 }
  0x61   : > { %417 = sbr.rel (%p2569_p13) target bundleno = 2001 (0x7d1), region = 64 }
  0x68   : > { %2083 = dma.done.wait (%p2570_p1), [#allocation3], 512   ;;  %p2571_p0 = pmov %p2570_p1 }
  0x6a   : > { %2085 = vsyncadd (%p2571_p0), [#allocation3], 4294966784  ;;  %p2572_p6 = pmov %p2571_p0 }
  0x6b   : > { %p2573_p5 = pmov %p2571_p0 }
  0x6c   : > { %2087 = dma.done.wait (%p2572_p6), [#allocation6], 32  }
  0x6d   : > { %2089 = vsyncadd (%p2573_p5), [#allocation6], 4294967264  ;;  %p478_p9 = scmp.lt.s32.totalorder %s2211_s25, 1  ;;  %v2115_v0 = vmov 0.0|0.0   ;;  %vm2116_vm0 = vmmov 0   ;;  %v2117_v1 = vmov 0.0  }
  0x6e   : > { %1839 = vmatprep.subr.bf16.mxu1 %v2115_v0  ;;  %1833 = vmatprep.subr.bf16.mxu0 %v2115_v0  ;;  %v582_v2 = vld [vmem:[%s2538_s4] sm:$0xff]  ;;  %v583_v3 = vld [vmem:[%s2538_s4 + $0x8] sm:$0xff]  ;;  %v584_v7 = vld [vmem:[%s2538_s4 + $0x10] sm:$0xff]  ;;  %vm508_vm1 = vcmask 261120   ;;  %vm750_vm2 = vcmask 64512   ;;  %s2118_s27 = smov 120  }
  0x6f   : > { %1768 = vmatprep.mubr.msk.f32.mxu1 %vm2116_vm0, %v2117_v1  ;;  %1757 = vmatprep.mubr.msk.f32.mxu0 %vm2116_vm0, %v2117_v1  ;;  %s479_s9 = scalar_select %p478_p9, %s2211_s25, 1  ;;  %v497_v4 = vld [vmem:[%s2537_s3] sm:$0xff]  ;;  %v1840_v5 = vpack.c.bf16 %v583_v3, %v582_v2  ;;  %v498_v6 = vld [vmem:[%s2537_s3 + $0x8] sm:$0xff]  ;;  %v585_v8 = vld [vmem:[%s2538_s4 + $0x18] sm:$0xff]  ;;  %vm1424_vm3 = vcmask 130048   ;;  %vm1426_vm4 = vcmask 195584  }
  0x70   : > { %v1834_v9 = vpack.c.bf16 %v498_v6, %v497_v4  ;;  %v499_v10 = vld [vmem:[%s2537_s3 + $0x10] sm:$0xff]  ;;  %v500_v11 = vld [vmem:[%s2537_s3 + $0x18] sm:$0xff]  ;;  %v1843_v12 = vpack.c.bf16 %v585_v8, %v584_v7  ;;  %v1691_v16 = vld [vmem:[%s2542_s8] ss:$0 sm:$0xff]  ;;  %s2119_s21 = smov 112   ;;  %s2120_s24 = smov 104  }
  0x71   : > { %s2357_s19 = sshll.u32 %s479_s9, 3  ;;  %1841 = vmatpush3.bf16.msra.mxu1 %v1840_v5  ;;  %v1837_v13 = vpack.c.bf16 %v500_v11, %v499_v10  ;;  %v1689_v17 = vld [vmem:[%s2541_s7] ss:$0 sm:$0xff]  ;;  %v667_v25 = vld [vmem:[%s2539_s5 + $0x8] sm:$0xff]  ;;  %v668_v26 = vld [vmem:[%s2539_s5 + $0x10] sm:$0xff]  ;;  %s475_s17 = sand.u32 1, %s2100_s22  }
  0x72   : > { %1835 = vmatpush3.bf16.msra.mxu0 %v1834_v9  ;;  %1842 = vmatprep.subr.bf16.mxu1 %v2115_v0  ;;  %s485_s18 = scalar_lea.vmem %s2535_s1, %s2357_s19  ;;  %s481_s16 = scalar_lea.vmem %s2534_s0, %s2357_s19  ;;  %v666_v24 = vld [vmem:[%s2539_s5] sm:$0xff]  ;;  %v669_v28 = vld [vmem:[%s2539_s5 + $0x18] sm:$0xff] }
  0x73   : > { %1836 = vmatprep.subr.bf16.mxu0 %v2115_v0  ;;  %v495_v14 = vld [vmem:[%s485_s18] sm:$0xff]  ;;  %v1846_v27 = vpack.c.bf16 %v667_v25, %v666_v24  ;;  %v1849_v29 = vpack.c.bf16 %v669_v28, %v668_v26  ;;  %s489_s23 = scalar_lea.vmem %s2536_s2, %s2357_s19  ;;  %s2122_s15 = smov 16  }
  0x74   : > { %v494_v15 = vld [vmem:[%s481_s16] sm:$0xff]  ;;  %s2123_s20 = smov 24   ;;  %s1710_s28 = sshll.u32 %s2211_s25, 7 }
  0x75   : > { %1844 = vmatpush3.bf16.msra.mxu1 %v1843_v12  ;;  %v496_v30 = vld [vmem:[%s489_s23] sm:$0xff]  ;;  %s2491_s14 = scalar_lea.hbm %s2546_s12, %s1710_s28  ;;  %s1520_s16 = scalar_lea.sflag [#allocation4], %s475_s17 }
  0x76   : > { %1838 = vmatpush3.bf16.msra.mxu0 %v1837_v13  ;;  %1782 = vmatprep.subr.mxu1 %v2117_v1  ;;  %v1693_v39 = vld [vmem:[#allocation5] ss:$0 sm:$0xff]  ;;  %p2574_p10 = scmp.ne.s32.totalorder %s2562_s13, 0  ;;  %s2124_s30 = smov [#allocation8]  }
  0x77   : > { %1845 = vmatprep.subr.bf16.mxu0 %v2115_v0  ;;  %s2042_s23 = sshll.u32 %s2124_s30, 4  ;;  %s2043_s23 = int_to_ptr.vmem [resolvable:$false] %s2042_s23 }
  0x78   : > { %1769 = vmatmul.mubr.msk.f32.vlgmr.msra.gmra.mrb[0].mxu1 %vm508_vm1, %v495_v14 }
  0x79   : > { %1758 = vmatmul.mubr.msk.f32.vlgmr.msra.gmra.mrb[0].mxu0 %vm508_vm1, %v494_v15  ;;  %1784 = vmatprep.mubr.msk.f32.mxu1 %vm2116_vm0, %v2117_v1 }
  0x7a   : > { %1779 = vmatprep.mubr.msk.f32.mxu0 %vm2116_vm0, %v2117_v1  ;;  %1847 = vmatpush3.bf16.msra.mxu0 %v1846_v27 }
  0x7b   : > { %1848 = vmatprep.subr.bf16.mxu0 %v2115_v0 }
  0x7e   : > { %1850 = vmatpush3.bf16.msra.mxu0 %v1849_v29 }
  0x7f   : > { %1802 = vmatprep.subr.mxu0 %v2117_v1 }
  0x81   : > { %1780 = vmatmul.mubr.msk.f32.vlgmr.msra.gmra.mrb[2].mxu0 %vm508_vm1, %v496_v30 }
  0x82   : > { %1804 = vmatprep.mubr.msk.f32.mxu0 %vm2116_vm0, %v2117_v1 }
 0x14b   : > { %v662_v18 = vpop.f32.mrb[0].mxu1 }
 0x14c   : > { %v663_v19 = vadd.f32 %v1691_v16, %v662_v18  ;;  %v1770_v20 = vpop.f32.mrb[1].mxu1  ;;  %v578_v21 = vpop.f32.mrb[0].mxu0 }
 0x14d   : > { %v579_v22 = vadd.f32 %v1689_v17, %v578_v21  ;;  %v1759_v23 = vpop.f32.mrb[1].mxu0 }
 0x14e   : > { %914 = vrot.lane.b32.xlu1 %v663_v19, %s2118_s27  ;;  %1783 = vmatpush3.xpose.msk.msra.mxu1 %vm750_vm2, %v663_v19 }
 0x14f   : > { %1787 = vmatprep.subr.mxu1 %v2117_v1 }
 0x151   : > { %1785 = vmatmul.mubr.msk.f32.vlgmr.msra.gmra.mrb[2].mxu1 %vm750_vm2, %v579_v22 }
 0x152   : > { %912 = vrot.lane.b32.xlu1 %v579_v22, %s2118_s27  ;;  %1789 = vmatprep.mubr.msk.f32.mxu1 %vm2116_vm0, %v2117_v1 }
 0x154   : > { %v746_v40 = vpop.f32.mrb[2].mxu0 }
 0x155   : > { %v2422_v41 = vadd.f32 %v1693_v39, %v746_v40  ;;  %v1781_v42 = vpop.f32.mrb[3].mxu0 }
 0x156   : > { %1079 = vrot.lane.b32.xlu1 %v579_v22, %s2119_s21 }
 0x157   : > { %1788 = vmatpush3.msra.mxu1 %v2422_v41 }
 0x158   : > { %1792 = vmatprep.subr.mxu1 %v2117_v1 }
 0x15a   : > { %1247 = vrot.lane.b32.xlu1 %v663_v19, %s2120_s24 }
 0x15e   : > { %1245 = vrot.lane.b32.xlu1 %v579_v22, %s2120_s24 }
 0x1c0   : > { %v915_v43 = vpop.permute.xlu1 %914 }
 0x1c4   : > { %v913_v44 = vpop.permute.xlu1 %912 }
 0x1c8   : > { %v1080_v45 = vpop.permute.xlu1 %1079 }
 0x1cc   : > { %v1248_v48 = vpop.permute.xlu1 %1247 }
 0x1d0   : > { %v1246_v50 = vpop.permute.xlu1 %1245 }
 0x224   : > { %v823_v31 = vpop.f32.mrb[2].mxu1 }
 0x225   : > { %v1786_v32 = vpop.f32.mrb[3].mxu1  ;;  %v827_v33 = vsel %vm750_vm2, %v823_v31, -inf }
 0x226   : > { %828 = vmax.xlane.f32.xlu0 %v827_v33  ;;  %v1428_v32 = vld [vmem:[#allocation2] sm:$0xff]  ;;  %v1429_v33 = vld [vmem:[#allocation2 + $0x8] sm:$0xff] }
 0x2b3   : > { %v829_v34 = vpop.xlane.xlu0 %828 }
 0x2b4   : > { %v830_v35 = vsub.f32 %v823_v31, %v829_v34  ;;  %v1852_v34 = vpack.c.bf16 %v1429_v33, %v1428_v32 }
 0x2b6   : > { %v831_v36 = vmul.f32 1.442695, %v830_v35  ;;  %v1430_v35 = vld [vmem:[#allocation2 + $0x10] sm:$0xff] }
 0x2b8   : > { %1938 = vpow2.f32 %v831_v36  ;;  %v1431_v36 = vld [vmem:[#allocation2 + $0x18] sm:$0xff] }
 0x2c2   : > { %v1939_v37 = vpop.eup %1938 }
 0x2c3   : > { %v833_v38 = vsel %vm750_vm2, %v1939_v37, 0.0 }
 0x2c4   : > { %834 = vadd.xlane.f32.xlu0 %v833_v38 }
 0x2da   : > { %1081 = vrot.lane.b32.xlu0 %v663_v19, %s2119_s21 }
 0x351   : > { %v835_v46 = vpop.xlane.xlu0 %834 }
 0x352   : > { %1940 = vrcp.f32 %v835_v46 }
 0x355   : > { %v1082_v47 = vpop.permute.xlu0 %1081 }
 0x356   : > { %1803 = vmatpush3.xpose.msk.msra.mxu0 %vm750_vm2, %v1082_v47 }
 0x357   : > { %1812 = vmatprep.subr.mxu0 %v2117_v1 }
 0x359   : > { %1805 = vmatmul.mubr.msk.f32.vlgmr.msra.gmra.mrb[4].mxu0 %vm750_vm2, %v1080_v45 }
 0x35a   : > { %1813 = vmatpush3.xpose.msk.msra.mxu0 %vm750_vm2, %v1248_v48  ;;  %1814 = vmatprep.mubr.msk.f32.mxu0 %vm2116_vm0, %v2117_v1 }
 0x35b   : > { %1851 = vmatprep.subr.bf16.mxu0 %v2115_v0 }
 0x35c   : > { %v1941_v49 = vpop.eup %1940 }
 0x35d   : > { %v2434_v51 = vmul.f32 %v1941_v49, %v1939_v37  ;;  %1815 = vmatmul.mubr.msk.f32.vlgmr.msra.gmra.mrb[6].mxu0 %vm750_vm2, %v1246_v50  ;;  %v1855_v37 = vpack.c.bf16 %v1431_v36, %v1430_v35 }
 0x35e   : > { %1830 = vmatprep.mubr.msk.f32.mxu0 %vm2116_vm0, %v2117_v1  ;;  %1853 = vmatpush3.bf16.msra.mxu0 %v1852_v34 }
 0x35f   : > { %1790 = vmatmul.mubr.msk.f32.vlgmr.msra.gmra.mrb[4].mxu1 %vm750_vm2, %v2434_v51  ;;  %1854 = vmatprep.subr.bf16.mxu0 %v2115_v0 }
 0x360   : > { %1793 = vmatpush3.xpose.msk.msra.mxu1 %vm750_vm2, %v915_v43  ;;  %1794 = vmatprep.mubr.msk.f32.mxu1 %vm2116_vm0, %v2117_v1 }
 0x361   : > { %1797 = vmatprep.subr.mxu1 %v2117_v1 }
 0x362   : > { %1856 = vmatpush3.bf16.msra.mxu0 %v1855_v37 }
 0x363   : > { %1795 = vmatmul.mubr.msk.f32.vlgmr.msra.gmra.mrb[6].mxu1 %vm750_vm2, %v913_v44 }
 0x364   : > { %1799 = vmatprep.mubr.msk.f32.mxu1 %vm2116_vm0, %v2117_v1 }
 0x42c   : > { %v1153_v52 = vpop.f32.mrb[4].mxu0 }
 0x42d   : > { %v1806_v53 = vpop.f32.mrb[5].mxu0  ;;  %v1157_v54 = vsel %vm750_vm2, %v1153_v52, -inf }
 0x42e   : > { %1158 = vmax.xlane.f32.xlu0 %v1157_v54 }
 0x430   : > { %v1319_v55 = vpop.f32.mrb[6].mxu0 }
 0x431   : > { %v1816_v56 = vpop.f32.mrb[7].mxu0  ;;  %v1323_v62 = vsel %vm750_vm2, %v1319_v55, -inf }
 0x432   : > { %v2449_v57 = vpop.f32.mrb[4].mxu1 }
 0x433   : > { %v1791_v58 = vpop.f32.mrb[5].mxu1 }
 0x436   : > { %v986_v59 = vpop.f32.mrb[6].mxu1 }
 0x437   : > { %v1796_v60 = vpop.f32.mrb[7].mxu1  ;;  %v990_v61 = vsel %vm750_vm2, %v986_v59, -inf }
 0x438   : > { %991 = vmax.xlane.f32.xlu1 %v990_v61 }
 0x43c   : > { %1324 = vmax.xlane.f32.xlu1 %v1323_v62 }
 0x4bb   : > { %v1159_v63 = vpop.xlane.xlu0 %1158 }
 0x4bc   : > { %v1160_v2 = vsub.f32 %v1153_v52, %v1159_v63 }
 0x4be   : > { %v1161_v3 = vmul.f32 1.442695, %v1160_v2 }
 0x4c0   : > { %1942 = vpow2.f32 %v1161_v3 }
 0x4c5   : > { %v992_v4 = vpop.xlane.xlu1 %991 }
 0x4c6   : > { %v993_v12 = vsub.f32 %v986_v59, %v992_v4 }
 0x4c8   : > { %v994_v13 = vmul.f32 1.442695, %v993_v12 }
 0x4c9   : > { %v1325_v5 = vpop.xlane.xlu1 %1324 }
 0x4ca   : > { %v1943_v6 = vpop.eup %1942  ;;  %v1326_v7 = vsub.f32 %v1319_v55, %v1325_v5 }
 0x4cb   : > { %v1163_v8 = vsel %vm750_vm2, %v1943_v6, 0.0 }
 0x4cc   : > { %v1327_v9 = vmul.f32 1.442695, %v1326_v7  ;;  %1164 = vadd.xlane.f32.xlu0 %v1163_v8 }
 0x4ce   : > { %1944 = vpow2.f32 %v1327_v9 }
 0x4cf   : > { %1946 = vpow2.f32 %v994_v13 }
 0x4d8   : > { %v1945_v10 = vpop.eup %1944 }
 0x4d9   : > { %v1329_v11 = vsel %vm750_vm2, %v1945_v10, 0.0  ;;  %v1947_v14 = vpop.eup %1946 }
 0x4da   : > { %1330 = vadd.xlane.f32.xlu1 %v1329_v11  ;;  %v996_v15 = vsel %vm750_vm2, %v1947_v14, 0.0 }
 0x4e2   : > { %1003 = vrot.lane.b32.xlu0 %v2422_v41, %s2118_s27  ;;  %s2471_s27 = sshll.u32 %s475_s17, 3 }
 0x4eb   : > { %1169 = vrot.lane.b32.xlu1 %v2422_v41, %s2119_s21  ;;  %s477_s21 = scalar_lea.vmem [#allocation8], %s2471_s27 }
 0x4ec   : > { %s1536_s9 = sshll.u32 %s477_s21, 4  ;;  %s1537_s9 = int_to_ptr.vmem [resolvable:$true] %s1536_s9 }
 0x4ed   : > { %s2038_s26 = scalar_lea.vmem %s1537_s9, 128  ;;  %p2045_p4 = scmp.lt.s32.totalorder %s1537_s9, %s2043_s23 }
 0x4ee   : > { %p2039_p12 = scmp.ne.s32.totalorder %s1537_s9, %s2038_s26 }
 0x4f0   : > { %p2040_p2 = pnand %p2039_p12, %p2574_p10 }
 0x4f2   : > { %p2041_p3 = pneg %p2040_p2 }
 0x50f   : > { %997 = vadd.xlane.f32.xlu1 %v996_v15 }
 0x520   : > { %1335 = vrot.lane.b32.xlu1 %v2422_v41, %s2120_s24  ;;  %s2121_s24 = smov 8  }
 0x559   : > { %v1165_v16 = vpop.xlane.xlu0 %1164 }
 0x55a   : > { %1948 = vrcp.f32 %v1165_v16 }
 0x55d   : > { %v1004_v17 = vpop.permute.xlu0 %1003 }
 0x55e   : > { %1798 = vmatpush3.msra.mxu1 %v1004_v17 }
 0x55f   : > { %1807 = vmatprep.subr.mxu1 %v2117_v1 }
 0x564   : > { %v1949_v21 = vpop.eup %1948 }
 0x565   : > { %v1167_v25 = vmul.f32 %v1949_v21, %v1943_v6 }
 0x567   : > { %v1331_v18 = vpop.xlane.xlu1 %1330 }
 0x56b   : > { %v1170_v19 = vpop.permute.xlu1 %1169 }
 0x59c   : > { %v998_v20 = vpop.xlane.xlu1 %997 }
 0x59d   : > { %1950 = vrcp.f32 %v998_v20 }
 0x59e   : > { %1952 = vrcp.f32 %v1331_v18 }
 0x5a0   : > { %v1336_v29 = vpop.permute.xlu1 %1335 }
 0x5a7   : > { %v1951_v22 = vpop.eup %1950 }
 0x5a8   : > { %v1000_v23 = vmul.f32 %v1951_v22, %v1947_v14  ;;  %v1953_v24 = vpop.eup %1952 }
 0x5a9   : > { %v1333_v27 = vmul.f32 %v1953_v24, %v1945_v10 }
 0x5aa   : > { %v1001_v26 = vadd.f32 %v1000_v23, %v2434_v51  ;;  %1800 = vmatmul.mubr.msk.f32.vlgmr.msra.gmra.mrb[8].mxu1 %vm750_vm2, %v1000_v23 }
 0x5ab   : > { %1808 = vmatpush3.msra.mxu1 %v1170_v19  ;;  %1809 = vmatprep.mubr.msk.f32.mxu1 %vm2116_vm0, %v2117_v1 }
 0x5ac   : > { %v1168_v28 = vadd.f32 %v1167_v25, %v1001_v26  ;;  %1817 = vmatprep.subr.mxu1 %v2117_v1 }
 0x5ae   : > { %1810 = vmatmul.mubr.msk.f32.vlgmr.msra.gmra.mrb[10].mxu1 %vm750_vm2, %v1167_v25  ;;  %v1334_v30 = vadd.f32 %v1333_v27, %v1168_v28 }
 0x5af   : > { %1818 = vmatpush3.msra.mxu1 %v1336_v29  ;;  %1819 = vmatprep.mubr.msk.f32.mxu1 %vm2116_vm0, %v2117_v1 }
 0x5b0   : > { %v1513_v31 = vmul.f32 0.25, %v1334_v30 }
 0x5b2   : > { %1820 = vmatmul.mubr.msk.f32.vlgmr.msra.gmra.mrb[12].mxu1 %vm750_vm2, %v1333_v27  ;;  %1514 = vst.msk [vmem:[%s477_s21] sm:$0xff] %vm750_vm2, %v1513_v31 }
 0x67d   : > { %v1075_v38 = vpop.f32.mrb[8].mxu1 }
 0x67e   : > { %1412 = vrot.lane.b32.xlu0 %v1075_v38, %s2121_s24  ;;  %v1801_v1 = vpop.f32.mrb[9].mxu1  ;;  %s2044_s24 = scalar_lea.vmem %s2043_s23, 256 }
 0x67f   : > { %p2046_p7 = scmp.lt.s32.totalorder %s2044_s24, %s2038_s26 }
 0x681   : > { %v1241_v39 = vpop.f32.mrb[10].mxu1  ;;  %p2047_p8 = por %p2046_p7, %p2045_p4 }
 0x682   : > { %1416 = vrot.lane.b32.xlu1 %v1241_v39, %s2122_s15  ;;  %v1811_v40 = vpop.f32.mrb[11].mxu1 }
 0x683   : > { %p2048_p11 = pnand %p2047_p8, %p2041_p3 }
 0x685   : > { %v1407_v41 = vpop.f32.mrb[12].mxu1 }
 0x686   : > { %1420 = vrot.lane.b32.xlu0 %v1407_v41, %s2123_s20  ;;  %v1821_v42 = vpop.f32.mrb[13].mxu1 }
 0x6f0   : > { %v1413_v0 = vpop.permute.xlu0 %1412 }
 0x6f1   : > { %v1423_v44 = vsel %vm750_vm2, %v2449_v57, %v1413_v0 }
 0x6f4   : > { %v1417_v43 = vpop.permute.xlu1 %1416 }
 0x6f5   : > { %v1425_v45 = vsel %vm1424_vm3, %v1423_v44, %v1417_v43 }
 0x6f8   : > { %v1421_v46 = vpop.permute.xlu0 %1420 }
 0x6f9   : > { %v1427_v47 = vsel %vm1426_vm4, %v1425_v45, %v1421_v46 }
 0x6fa   : > { %1831 = vmatmul.mubr.msk.f32.vlgmr.msra.gmra.mrb[8].mxu0 %vm508_vm1, %v1427_v47 }
 0x6fb   : > { %2051 = shalt.err (!%p2048_p11)
}
 0x6fc   : > { %s2052_s25 = scalar_lea.hbm %s2491_s14, 128  ;;  %s2056_s21 = scalar_lea.hbm %s2546_s12, 256 }
 0x6fd   : > { %p2053_p13 = scmp.ne.s32.totalorder %s2491_s14, %s2052_s25  ;;  %p2057_p6 = scmp.lt.u32.totalorder %s2491_s14, %s2546_s12 }
 0x6fe   : > { %p2058_p5 = scmp.lt.u32.totalorder %s2056_s21, %s2052_s25  ;;  %p2060_p12 = scmp.lt.u32.totalorder %s2052_s25, %s2491_s14 }
 0x6ff   : > { %p2054_p1 = pnand %p2053_p13, %p2574_p10 }
 0x700   : > { %p2059_p9 = por %p2058_p5, %p2057_p6 }
 0x701   : > { %p2055_p0 = pneg %p2054_p1 }
 0x702   : > { %p2061_p2 = por %p2060_p12, %p2059_p9 }
 0x704   : > { %p2062_p3 = pnand %p2061_p2, %p2055_p0 }
 0x706   : > { %2065 = shalt.err (!%p2062_p3)
}
 0x707   : > { %1869 = dma.vmem_to_hbm [thread:$0]  (%p2574_p10), %s1537_s9, 128, %s2491_s14, %s1520_s16   ;;  %v1707_v48 = vld [vmem:[#allocation7] ss:$0 sm:$0xff] }
 0x708   : > { %s493_s29 = scalar_lea.vmem %s2545_s11, %s2357_s19 }
 0x7cd   : > { %v1508_v49 = vpop.f32.mrb[8].mxu0 }
 0x7ce   : > { %v1509_v50 = vadd.f32 %v1707_v48, %v1508_v49  ;;  %v1832_v51 = vpop.f32.mrb[9].mxu0 }
 0x7d0   : > { %1512 = vst.msk [vmem:[%s493_s29] sm:$0xff] %vm508_vm1, %v1509_v50 }
 0x7d1 PF: > { %s2575_s26 = sld [smem:[#allocation14_spill]]  ;;  %s2576_s30 = sld [smem:[#allocation12_spill]] }
 0x7d2   : > { %s2577_s23 = sld [smem:[#allocation17_spill]] }
 0x7d7   : > { %p1891_p4 = scmp.ge.s32.totalorder %s2575_s26, 2  ;;  %s1555_s24 = sand.u32 1, %s2576_s30  }
 0x7d8   : > { %p2578_p7 = scmp.ne.s32.totalorder %s2577_s23, 0  ;;  %s1556_s13 = scalar_lea.sflag [#allocation4], %s1555_s24 }
 0x7da   : > { %p1882_p8 = pnand %p1891_p4, %p2578_p7 }
 0x7dc   : > { %2091 = dma.done.wait (!%p1882_p8), %s1556_s13, 128  }
 0x7dd   : > { %2093 = vsyncadd (!%p1882_p8), %s1556_s13, 4294967168  ;;  %s2579_s24 = sld [smem:[#allocation15_spill]]  ;;  %s2580_s9 = sld [smem:[#allocation13_spill]] }
 0x7de   : > { %s2581_s23 = sld [smem:[#allocation16_spill]]  ;;  %s2582_s21 = smov %s2100_s22 }
 0x7e3   : > { %p25_p10 = scmp.ge.s32.totalorder %s2579_s24, 4   ;;  %s2583_s22 = smov %s2580_s9 }
 0x7e5   :  { %27 = sbr.rel (!%p25_p10) target bundleno = 7 (0x7), region = 130 }
 0x7ec   :  { %1561 = vsyncpa [#allocation3], 1 }
 0x7ed   :  { %1563 = vsyncpa [#allocation3 + $0x1], 1 }
 0x7ee   :  { %1564 = vsyncpa [#allocation6], 1 }
 0x7ef   :  { %1565 = vsyncpa [#allocation4], 1 }
 0x7f0   :  { %1567 = vsyncpa [#allocation4 + $0x1], 1 }

</bundles_post_ra>
